<compile_context>
chip_gen: v5e
topology: v5e:2x2
jax: 0.10.0
libtpu: 0.0.40
codegen_flags: <defaults>
</compile_context>

<pallas_src>
import jax
import jax.numpy as jnp
from jax import lax
from jax.experimental import pallas as pl
from jax.experimental.pallas import tpu as pltpu


def _round_up(n: int, m: int) -> int:
    return ((n + m - 1) // m) * m


def _fused_linear_kernel(x_ref, w_ref, b_ref, o_ref):
    """out[0, j] = sum_k w[0, k] * x[j, k] + b, written as a lane-dense row."""
    # x_ref: (TB, 128) f32/bf16 ; w_ref: (8, 128) (row 0 = fused weight, rest 0)
    # b_ref: (1, 1) f32         ; o_ref: (1, TB) f32
    acc = lax.dot_general(
        w_ref[...], x_ref[...],
        dimension_numbers=(((1,), (1,)), ((), ())),   # NT: contract feature dims
        preferred_element_type=jnp.float32,
    )                                                 # (8, TB); rows 1..7 are zero
    o_ref[...] = (acc[0:1, :] + b_ref[...]).astype(o_ref.dtype)


def mlp_forward(x, w1, b1, w2, b2, w3, b3, *, block_b=2048, use_bf16=False):
    """x: (B, 128) f32.  Weights are (in, out); biases (1, out).  Returns (B, 1) f32."""
    B, F = x.shape
    assert F == w1.shape[0] == 128

    # Exact algebraic fusion of the purely-linear chain (no activations).
    w_fused = w1 @ w2 @ w3                      # (128, 1)
    b_fused = b1 @ w2 @ w3 + b2 @ w3 + b3       # (1, 1)
    # Row 0 holds the fused weight; rows 1..7 are zero so the MXU LHS is a
    # clean (8, 128) tile.
    w_row = jnp.pad(w_fused.T, ((0, 7), (0, 0)))    # (8, 128)

    # Batch tiling: one tile if the batch is small, else block_b-row tiles.
    if B <= block_b:
        tb = _round_up(B, 8)
    else:
        assert block_b % 128 == 0, "block_b must be a multiple of 128"
        tb = block_b
    b_pad = _round_up(B, tb)
    grid = (b_pad // tb,)

    if b_pad != B:
        x = jnp.pad(x, ((0, b_pad - B), (0, 0)))

    in_dtype = jnp.bfloat16 if use_bf16 else x.dtype
    x_in = x.astype(in_dtype)
    w_in = w_row.astype(in_dtype)
    b_in = b_fused.astype(jnp.float32)          # bias add stays f32 (v5e-safe)

    cost = pl.CostEstimate(
        flops=2 * b_pad * F,
        transcendentals=0,
        bytes_accessed=int(x_in.size * x_in.dtype.itemsize
                           + w_in.size * w_in.dtype.itemsize
                           + b_in.size * 4 + b_pad * 4),
    )

    out = pl.pallas_call(
        _fused_linear_kernel,
        out_shape=jax.ShapeDtypeStruct((1, b_pad), jnp.float32),
        grid=grid,
        in_specs=[
            pl.BlockSpec((tb, F), lambda i: (i, 0)),     # x: batch-tiled
            pl.BlockSpec((8, F), lambda i: (0, 0)),      # fused weight: resident
            pl.BlockSpec((1, 1), lambda i: (0, 0)),      # fused bias: resident
        ],
        out_specs=pl.BlockSpec((1, tb), lambda i: (0, i)),   # lane-dense output row
        compiler_params=pltpu.CompilerParams(
            dimension_semantics=("parallel",)),
        cost_estimate=cost,
    )(x_in, w_in, b_in)

    return out.reshape(b_pad, 1)[:B]


def init_linear(key, in_features, out_features):
    """PyTorch nn.Linear default init: U(-1/sqrt(in), 1/sqrt(in))."""
    kw, kb = jax.random.split(key)
    bound = 1.0 / jnp.sqrt(jnp.float32(in_features))
    # Stored as (in, out) so the fused weight is just W1 @ W2 @ W3.
    w = jax.random.uniform(kw, (in_features, out_features), jnp.float32,
                           minval=-bound, maxval=bound)
    b = jax.random.uniform(kb, (1, out_features), jnp.float32,
                           minval=-bound, maxval=bound)
    return w, b


if __name__ == "__main__":
    key = jax.random.PRNGKey(0)
    kx, kx2, k1, k2, k3 = jax.random.split(key, 5)

    # Small shapes consistent with the module: batch=8, in_features=128.
    B = 8
    x = jax.random.normal(kx, (B, 128), dtype=jnp.float32)

    w1, b1 = init_linear(k1, 128, 32)
    w2, b2 = init_linear(k2, 32, 16)   # see TODO(synk): module declares (64, 16)
    w3, b3 = init_linear(k3, 16, 1)

    def ref_forward(xx):
        return ((xx @ w1 + b1) @ w2 + b2) @ w3 + b3

    # 1) Single-tile f32 run at the small demo shape.
    out = jax.block_until_ready(mlp_forward(x, w1, b1, w2, b2, w3, b3))
    assert out.shape == (B, 1)
    assert jnp.allclose(out, ref_forward(x), atol=1e-4, rtol=1e-4)

    # 2) Batch-tiled f32 run (exercises the grid + padding path).
    B2 = 300
    x2 = jax.random.normal(kx2, (B2, 128), dtype=jnp.float32)
    out2 = jax.block_until_ready(
        mlp_forward(x2, w1, b1, w2, b2, w3, b3, block_b=128))
    assert out2.shape == (B2, 1)
    assert jnp.allclose(out2, ref_forward(x2), atol=1e-4, rtol=1e-4)

    # 3) bf16-input run (HBM-bandwidth lever on v6e/v7x); accumulation is f32.
    out3 = jax.block_until_ready(
        mlp_forward(x2, w1, b1, w2, b2, w3, b3, block_b=128, use_bf16=True))
    assert out3.shape == (B2, 1)
    assert jnp.allclose(out3, ref_forward(x2), atol=3e-2, rtol=3e-2)

    print("KERNEL_OK")
</pallas_src>

<mosaic_0001>
module attributes {stable_mosaic.version = 11 : i64} {
  func.func @_fused_linear_kernel(%arg0: i32, %arg1: memref<8x128xf32, #tpu.memory_space<vmem>>, %arg2: memref<8x128xf32, #tpu.memory_space<vmem>>, %arg3: memref<1x1xf32, #tpu.memory_space<vmem>>, %arg4: memref<1x8xf32, #tpu.memory_space<vmem>>) attributes {dimension_semantics = [#tpu.dimension_semantics<parallel>], iteration_bounds = array<i64: 1>, scalar_prefetch = 0 : i64, scratch_operands = 0 : i64, tpu.core_type = #tpu.core_type<tc>, window_params = [{transform_indices = @transform_0, window_bounds = array<i64: 8, 128>}, {pipeline_mode = #tpu.pipeline_mode<synchronous>, transform_indices = @transform_1, window_bounds = array<i64: 8, 128>}, {pipeline_mode = #tpu.pipeline_mode<synchronous>, transform_indices = @transform_2, window_bounds = array<i64: 1, 1>}, {transform_indices = @transform_3, window_bounds = array<i64: 1, 8>}]} {
    %c0 = arith.constant 0 : index
    %c0_0 = arith.constant 0 : index
    %0 = vector.load %arg2[%c0, %c0_0] : memref<8x128xf32, #tpu.memory_space<vmem>>, vector<8x128xf32>
    %c0_1 = arith.constant 0 : index
    %c0_2 = arith.constant 0 : index
    %1 = vector.load %arg1[%c0_1, %c0_2] : memref<8x128xf32, #tpu.memory_space<vmem>>, vector<8x128xf32>
    %cst = arith.constant dense<0.000000e+00> : vector<8x8xf32>
    %2 = tpu.matmul %0, %1, %cst {dimension_numbers = #tpu.dot_dimension_numbers<[1], [1], [0], [0], [0, 0, 1, 0], [], []>} : vector<8x128xf32>, vector<8x128xf32>, vector<8x8xf32> -> vector<8x8xf32>
    %3 = vector.extract_strided_slice %2 {offsets = [0, 0], sizes = [1, 8], strides = [1, 1]} : vector<8x8xf32> to vector<1x8xf32>
    %c0_3 = arith.constant 0 : index
    %c0_4 = arith.constant 0 : index
    %4 = vector.load %arg3[%c0_3, %c0_4] : memref<1x1xf32, #tpu.memory_space<vmem>>, vector<1x1xf32>
    %5 = vector.broadcast %4 : vector<1x1xf32> to vector<1x8xf32>
    %6 = arith.addf %3, %5 : vector<1x8xf32>
    %c0_5 = arith.constant 0 : index
    %c0_6 = arith.constant 0 : index
    %7 = vector.load %arg4[%c0_5, %c0_6] : memref<1x8xf32, #tpu.memory_space<vmem>>, vector<1x8xf32>
    tpu.vector_store %arg4[%c0_5, %c0_6], %6 {strides = array<i32>} : memref<1x8xf32, #tpu.memory_space<vmem>>, vector<1x8xf32>,
    return
  }
  func.func @transform_0(%arg0: i32) -> (i32, i32) {
    %c0_i32 = arith.constant 0 : i32
    %c0_i32_0 = arith.constant 0 : i32
    return %arg0, %c0_i32 : i32, i32
  }
  func.func @transform_1(%arg0: i32) -> (i32, i32) {
    %c0_i32 = arith.constant 0 : i32
    %c0_i32_0 = arith.constant 0 : i32
    %c0_i32_1 = arith.constant 0 : i32
    return %c0_i32, %c0_i32_0 : i32, i32
  }
  func.func @transform_2(%arg0: i32) -> (i32, i32) {
    %c0_i32 = arith.constant 0 : i32
    %c0_i32_0 = arith.constant 0 : i32
    %c0_i32_1 = arith.constant 0 : i32
    return %c0_i32, %c0_i32_0 : i32, i32
  }
  func.func @transform_3(%arg0: i32) -> (i32, i32) {
    %c0_i32 = arith.constant 0 : i32
    %c0_i32_0 = arith.constant 0 : i32
    return %c0_i32, %arg0 : i32, i32
  }
}

</mosaic_0001>

<bundles_post_ra>
// kernel: tpu_custom_call.1
= control target key start
LH: loop header
LB: loop body
LE: loop exit
PB: predicated region body
PF: predicated region fallthrough
CT: control target
= control target key end

     0   :  { %s214_s0 = inlined_call_operand.hbm [shape: f32[8,128], index: 0, kind: input, shape index: {}]   ;;  %s215_s1 = inlined_call_operand.hbm [shape: f32[8,128], index: 1, kind: input, shape index: {}]   ;;  %s216_s2 = inlined_call_operand.<no memory space> [shape: f32[1,1], index: 2, kind: input, shape index: {}]   ;;  %s217_s3 = inlined_call_operand.hbm [shape: f32[1,8], index: 3, kind: output, shape index: {}]  }
   0x1   :  { %v8_v0 = vstv %s216_s2 }
   0x2   :  { %9 = vst [vmem:[#allocation2] sm:$0x1] %v8_v0 }
   0x3   :  { %10 = vsyncpa [#allocation4], 0 }
   0x4   :  { %11 = vsyncpa [#allocation7], 0 }
   0x5   :  { %12 = vsyncpa [#allocation5], 0  ;;  %s18_s16 = sshll.u32 %s214_s0, 4  ;;  %s178_s17 = smov [#allocation3]   ;;  %s19_s16 = int_to_ptr.hbm [resolvable:$true] %s18_s16 }
   0x6   :  { %s20_s18 = sshll.u32 %s178_s17, 4  ;;  %s29_s21 = sshll.u32 %s215_s1, 4  ;;  %s21_s18 = int_to_ptr.vmem [resolvable:$true] %s20_s18  ;;  %s30_s21 = int_to_ptr.hbm [resolvable:$true] %s29_s21 }
   0x7   :  { %23 = dma.hbm_to_vmem [thread:$0]  %s19_s16, 128, %s21_s18, [#allocation4]  }
   0x8   :  { %s179_s22 = smov [#allocation6]  }
   0x9   :  { %s31_s2 = sshll.u32 %s179_s22, 4  ;;  %s32_s2 = int_to_ptr.vmem [resolvable:$true] %s31_s2 }
   0xa   :  { %34 = dma.hbm_to_vmem [thread:$0]  %s30_s21, 128, %s32_s2, [#allocation7]  }
   0xb   :  { %172 = dma.done.wait [#allocation4], 128  }
   0xc   :  { %173 = vsyncadd [#allocation4], 4294967168 }
   0xd   :  { %174 = dma.done.wait [#allocation7], 128  }
   0xe   :  { %175 = vsyncadd [#allocation7], 4294967168  ;;  %v180_v1 = vmov 0   ;;  %v46_v2 = vld [vmem:[#allocation3] sm:$0xff]  ;;  %v67_v3 = vld [vmem:[#allocation2] sm:$0x1] }
   0xf   :  { %99 = vset.pattern.permute.xlu0 %v180_v1  ;;  %62 = vmatpush.xpose.msra.mxu0 %v46_v2  ;;  %v45_v4 = vld [vmem:[#allocation6] sm:$0xff]  ;;  %s181_s0 = smov [#allocation8]   ;;  %s84_s25 = sshll.u32 %s217_s3, 4  ;;  %vm75_vm0 = vcmask 57344   ;;  %s85_s25 = int_to_ptr.hbm [resolvable:$true] %s84_s25 }
  0x10   :  { %70 = vperm.xlu0 %99, %v67_v3   ;;  %s82_s1 = sshll.u32 %s181_s0, 4  ;;  %s83_s1 = int_to_ptr.vmem [resolvable:$true] %s82_s1 }
  0x12   :  { %63 = vmatmul.f32.vlgmr.msra.gmra.mxu0 %v45_v4 }
  0x82   :  { %v71_v5 = vpop.permute.xlu0 %70 }
  0x83   :  { %v73_v6 = vperm.slane %v71_v5, 0 }
  0x8f   :  { %v64_v7 = vpop.f32.mrf.mxu0 }
  0x90   :  { %v74_v8 = vadd.f32 %v73_v6, %v64_v7 }
  0x92   :  { %76 = vst.msk [vmem:[#allocation8] sm:$0x1] %vm75_vm0, %v74_v8 }
  0x93   :  { %87 = dma.vmem_to_hbm [thread:$0]  %s83_s1, 16, %s85_s25, [#allocation5]  }
  0x94   :  { %176 = dma.done.wait [#allocation5], 16  }
  0x95   :  { %177 = vsyncadd [#allocation5], 4294967280 }
  0x96   :  { %92 = vsyncpa [#allocation4], 1 }
  0x97   :  { %93 = vsyncpa [#allocation7], 1 }
  0x98   :  { %94 = vsyncpa [#allocation5], 1 }

</bundles_post_ra>
